<compile_context>
chip_gen: v5e
topology: v5e:2x2
jax: 0.10.0
libtpu: 0.0.40
codegen_flags: <defaults>
</compile_context>

<pallas_src>
import functools

import jax
import jax.numpy as jnp
from jax.experimental import pallas as pl
from jax.experimental.pallas import tpu as pltpu


def _make_drs_kernel(Bs, Cin, Cout, K, Wp, Wo, HWp):
    KK = K * K

    def kernel(x_ref, wconv_ref, bns_ref, bnb_ref, wfc_ref, b1_ref, b2_ref,
               o_ref):
        # junk-column mask (padded-width coords): column j = q % Wp valid if j < Wo
        q = jax.lax.broadcasted_iota(jnp.int32, (Cout, HWp), 1)
        valid = (q % Wp) < Wo

        bns = bns_ref[...]                      # (Cout, 1) folded BN scale
        bnb = bnb_ref[...]                      # (Cout, 1) folded BN bias

        def excite(col, w1t, b1row, w2, b2col):
            # VPU/XLU squeeze-excitation: no MXU matvecs.
            # layer1: w1t[k, c] = W1[c, k]; broadcast-mul + sublane reduce -> row
            h = jnp.sum(w1t * col, axis=0, keepdims=True) + b1row     # (1, C)
            h = jnp.maximum(h, 0.0)
            # layer2: broadcast-mul + lane reduce -> column
            y = jnp.sum(w2 * h, axis=1, keepdims=True) + b2col        # (C, 1)
            return jax.nn.sigmoid(y)

        for b in range(Bs):                     # static unroll over images in step
            x_img = x_ref[b]                    # (Cin, PADL) f32, one VMEM load

            # ---- ASB conv: 9 shifted taps, each a static lane slice, f32 accumulate
            acc = jnp.zeros((Cout, HWp), jnp.float32)
            for t in range(KK):
                kh, kw = t // K, t % K
                s = kh * Wp + kw
                tap = x_img[:, s:s + HWp]                        # (Cin, HWp)
                acc = acc + jnp.dot(wconv_ref[t], tap,
                                    preferred_element_type=jnp.float32)

            # folded BN (eval mode) + sigmoid, lane-dense (Cout, HWp)
            std = jax.nn.sigmoid(acc * bns + bnb)

            # ---- ANB squeeze: per-channel max/min over spatial (junk cols masked)
            mx = jnp.max(jnp.where(valid, std, -1.0), axis=1, keepdims=True)
            mn = jnp.min(jnp.where(valid, std, 2.0), axis=1, keepdims=True)

            # ---- MASE / MISE excitation on VPU
            im_h = excite(mx, wfc_ref[0], b1_ref[0], wfc_ref[1], b2_ref[0])
            im_l = excite(mn, wfc_ref[2], b1_ref[1], wfc_ref[3], b2_ref[1])

            # ---- normalize + clip: exact reciprocal on (Cout,1), broadcast multiply
            inv = 1.0 / jnp.maximum(im_h - im_l, jnp.float32(1e-5))
            o_ref[b] = jnp.clip((std - im_l) * inv, 0.0, 1.0)

    return kernel


def drs_forward(x_nchw, params, *, kernel_size, padding, grid_steps=None):
    """x_nchw: (B, Cin, H, W) float32 -> (B, Cout, Ho, Wo) float32."""
    K, p = kernel_size, padding
    x = x_nchw.astype(jnp.float32)
    B, Cin, H, W = x.shape
    Ho, Wo = H + 2 * p - K + 1, W + 2 * p - K + 1    # stride 1
    Hp, Wp = H + 2 * p, W + 2 * p
    HWp = Ho * Wp                                     # padded-width flat output length
    KK = K * K

    # zero-pad spatially once, flatten, pad the flat axis so every tap's static
    # slice [s, s + HWp) stays in bounds and the input lane dim is 128-aligned.
    max_start = (K - 1) * Wp + (K - 1)
    need = max(Hp * Wp, max_start + HWp)
    PADL = ((need + 127) // 128) * 128
    xp = jnp.pad(x, ((0, 0), (0, 0), (p, p), (p, p)))
    xflat = jnp.pad(xp.reshape(B, Cin, Hp * Wp),
                    ((0, 0), (0, 0), (0, PADL - Hp * Wp)))

    # ---- parameter packing (tiny, wrapper-side) ----
    wconv = params["wconv"].astype(jnp.float32)                   # (Cout,Cin,K,K)
    Cout = wconv.shape[0]
    wtaps = jnp.transpose(wconv, (2, 3, 0, 1)).reshape(KK, Cout, Cin)
    scale = params["gamma"] / jnp.sqrt(params["rvar"] + 1e-5)     # BN eval mode
    bnscale = scale.reshape(Cout, 1)
    bnbias = ((params["cbias"] - params["rmean"]) * scale
              + params["beta"]).reshape(Cout, 1)
    # excitation weights: layer1 stored transposed (sublane-reduce form),
    # layer2 stored as-is (lane-reduce form); no zero-padded block-diagonal.
    wfc = jnp.stack([params["w1h"].T, params["w2h"],
                     params["w1l"].T, params["w2l"]]).astype(jnp.float32)
    b1 = jnp.stack([params["b1h"].reshape(1, Cout),
                    params["b1l"].reshape(1, Cout)]).astype(jnp.float32)
    b2 = jnp.stack([params["b2h"].reshape(Cout, 1),
                    params["b2l"].reshape(Cout, 1)]).astype(jnp.float32)

    # grid: default 2 parallel steps so both v7x TensorCores get work; pass
    # grid_steps=1 on single-TC v5e/v6e to collapse to one step.
    if grid_steps is None:
        grid_steps = 2 if (B >= 2 and B % 2 == 0) else 1
    assert B % grid_steps == 0, (B, grid_steps)
    Bs = B // grid_steps

    kern = _make_drs_kernel(Bs=Bs, Cin=Cin, Cout=Cout, K=K, Wp=Wp, Wo=Wo,
                            HWp=HWp)
    # NOTE: Cout is a multiple of 8 here so channel sublane slices are aligned;
    # for odd Cout everything still works (full-array blocks) but pads sublanes.
    const = lambda shape: pl.BlockSpec(shape, lambda g: (0,) * len(shape))
    in_specs = [
        pl.BlockSpec((Bs, Cin, PADL), lambda g: (g, 0, 0)),   # padded-flat input
        const((KK, Cout, Cin)),                               # conv taps
        const((Cout, 1)), const((Cout, 1)),                   # folded BN scale/bias
        const((4, Cout, Cout)),                               # fc weights (h1,h2,l1,l2)
        const((2, 1, Cout)),                                  # fc1 biases (rows)
        const((2, Cout, 1)),                                  # fc2 biases (cols)
    ]

    out = pl.pallas_call(
        kern,
        out_shape=jax.ShapeDtypeStruct((B, Cout, HWp), jnp.float32),
        grid_spec=pltpu.PrefetchScalarGridSpec(
            num_scalar_prefetch=0,
            grid=(grid_steps,),
            in_specs=in_specs,
            out_specs=pl.BlockSpec((Bs, Cout, HWp), lambda g: (g, 0, 0)),
        ),
        compiler_params=pltpu.CompilerParams(
            dimension_semantics=("parallel",)),               # v7x: step / TC
    )(xflat, wtaps, bnscale, bnbias, wfc, b1, b2)

    # drop the Wp-Wo junk columns of padded-width coords and fold back to NCHW
    # (wrapper slice: 1x output bytes; the kernel stores stay lane-dense).
    return out.reshape(B, Cout, Ho, Wp)[:, :, :, :Wo]


def init_params(key, Cin, Cout, K):
    ks = jax.random.split(key, 14)
    wconv = 0.1 * jax.random.normal(ks[0], (Cout, Cin, K, K), jnp.float32)
    cbias = 0.1 * jax.random.normal(ks[1], (Cout,), jnp.float32)
    gamma = 1.0 + 0.1 * jax.random.normal(ks[2], (Cout,), jnp.float32)
    beta = 0.1 * jax.random.normal(ks[3], (Cout,), jnp.float32)
    rmean = 0.1 * jax.random.normal(ks[4], (Cout,), jnp.float32)
    rvar = 1.0 + 0.5 * jax.random.uniform(ks[5], (Cout,), jnp.float32)

    def linear(kw_, kb_, bias_shift):
        w_ = 0.1 * jax.random.normal(kw_, (Cout, Cout), jnp.float32)
        b_ = bias_shift + 0.1 * jax.random.normal(kb_, (Cout,), jnp.float32)
        return w_, b_

    # second-layer bias offsets (+1 / -1) keep im_h - im_l well away from the
    # 1e-5 clamp so the test tolerance isn't dominated by denominator blow-up;
    # forward-pass semantics are unchanged (this is just the test data).
    w1h, b1h = linear(ks[6], ks[7], 0.0)
    w2h, b2h = linear(ks[8], ks[9], 1.0)
    w1l, b1l = linear(ks[10], ks[11], 0.0)
    w2l, b2l = linear(ks[12], ks[13], -1.0)
    return dict(wconv=wconv, cbias=cbias, gamma=gamma, beta=beta,
                rmean=rmean, rvar=rvar,
                w1h=w1h, b1h=b1h, w2h=w2h, b2h=b2h,
                w1l=w1l, b1l=b1l, w2l=w2l, b2l=b2l)


def drs_reference(x_nchw, params, *, kernel_size, padding):
    """Pure-JAX f32 reference of the same forward pass (eval-mode BN)."""
    p = padding
    hp = jax.lax.Precision.HIGHEST
    mm = functools.partial(jnp.matmul, precision=hp)
    x = x_nchw.astype(jnp.float32)

    y = jax.lax.conv_general_dilated(
        x, params["wconv"], window_strides=(1, 1),
        padding=[(p, p), (p, p)],
        dimension_numbers=("NCHW", "OIHW", "NCHW"),
        precision=hp)
    y = y + params["cbias"][None, :, None, None]
    scale = params["gamma"] / jnp.sqrt(params["rvar"] + 1e-5)
    y = (y - params["rmean"][None, :, None, None]) * scale[None, :, None, None] \
        + params["beta"][None, :, None, None]
    std = jax.nn.sigmoid(y)                                       # (B,Cout,H,W)

    mx = jnp.max(std, axis=(2, 3))                                # (B, Cout)
    mn = jnp.min(std, axis=(2, 3))
    im_h = jax.nn.sigmoid(
        mm(jnp.maximum(mm(mx, params["w1h"].T) + params["b1h"], 0.0),
           params["w2h"].T) + params["b2h"])
    im_l = jax.nn.sigmoid(
        mm(jnp.maximum(mm(mn, params["w1l"].T) + params["b1l"], 0.0),
           params["w2l"].T) + params["b2l"])
    denom = jnp.maximum(im_h - im_l, 1e-5)
    out = jnp.clip((std - im_l[:, :, None, None]) / denom[:, :, None, None],
                   0.0, 1.0)
    return out


if __name__ == "__main__":
    B, Cin, H, W = 2, 4, 16, 16
    Cout, K, pad = 8, 3, 1

    key = jax.random.PRNGKey(0)
    kx, kp = jax.random.split(key)
    x = jax.random.normal(kx, (B, Cin, H, W), jnp.float32)
    params = init_params(kp, Cin, Cout, K)

    fwd = jax.jit(functools.partial(drs_forward, kernel_size=K, padding=pad))
    out = jax.block_until_ready(fwd(x, params))

    assert out.shape == (B, Cout, H, W), out.shape
    ref = drs_reference(x, params, kernel_size=K, padding=pad)
    err = float(jnp.max(jnp.abs(out - ref)))
    # residual diff: f32 accumulation order only (conv is f32 in-kernel now)
    assert err < 5e-3, err

    print("KERNEL_OK")
</pallas_src>

<mosaic_0001>
module attributes {stable_mosaic.version = 11 : i64} {
  func.func @kernel(%arg0: i32, %arg1: memref<1x4x384xf32, #tpu.memory_space<vmem>>, %arg2: memref<9x8x4xf32, #tpu.memory_space<vmem>>, %arg3: memref<8x1xf32, #tpu.memory_space<vmem>>, %arg4: memref<8x1xf32, #tpu.memory_space<vmem>>, %arg5: memref<4x8x8xf32, #tpu.memory_space<vmem>>, %arg6: memref<2x1x8xf32, #tpu.memory_space<vmem>>, %arg7: memref<2x8x1xf32, #tpu.memory_space<vmem>>, %arg8: memref<1x8x288xf32, #tpu.memory_space<vmem>>) attributes {dimension_semantics = [#tpu.dimension_semantics<parallel>], iteration_bounds = array<i64: 2>, scalar_prefetch = 0 : i64, scratch_operands = 0 : i64, tpu.core_type = #tpu.core_type<tc>, window_params = [{transform_indices = @transform_0, window_bounds = array<i64: 1, 4, 384>}, {pipeline_mode = #tpu.pipeline_mode<synchronous>, transform_indices = @transform_1, window_bounds = array<i64: 9, 8, 4>}, {pipeline_mode = #tpu.pipeline_mode<synchronous>, transform_indices = @transform_2, window_bounds = array<i64: 8, 1>}, {pipeline_mode = #tpu.pipeline_mode<synchronous>, transform_indices = @transform_3, window_bounds = array<i64: 8, 1>}, {pipeline_mode = #tpu.pipeline_mode<synchronous>, transform_indices = @transform_4, window_bounds = array<i64: 4, 8, 8>}, {pipeline_mode = #tpu.pipeline_mode<synchronous>, transform_indices = @transform_5, window_bounds = array<i64: 2, 1, 8>}, {pipeline_mode = #tpu.pipeline_mode<synchronous>, transform_indices = @transform_6, window_bounds = array<i64: 2, 8, 1>}, {transform_indices = @transform_7, window_bounds = array<i64: 1, 8, 288>}]} {
    %0 = tpu.iota {dimensions = array<i32: 1>} : vector<8x288xi32>
    %c18_i32 = arith.constant 18 : i32
    %c0_i32 = arith.constant 0 : i32
    %1 = arith.cmpi eq, %c18_i32, %c0_i32 : i32
    %c1_i32 = arith.constant 1 : i32
    %2 = arith.select %1, %c1_i32, %c18_i32 : i32
    %3 = vector.broadcast %2 : i32 to vector<8x288xi32>
    %4 = arith.remsi %0, %3 : vector<8x288xi32>
    %c0_i32_0 = arith.constant 0 : i32
    %5 = vector.broadcast %c0_i32_0 : i32 to vector<8x288xi32>
    %6 = arith.cmpi ne, %4, %5 : vector<8x288xi32>
    %c0_i32_1 = arith.constant 0 : i32
    %7 = vector.broadcast %c0_i32_1 : i32 to vector<8x288xi32>
    %8 = arith.cmpi slt, %4, %7 : vector<8x288xi32>
    %c0_i32_2 = arith.constant 0 : i32
    %9 = arith.cmpi slt, %2, %c0_i32_2 : i32
    %10 = vector.broadcast %9 : i1 to vector<8x288xi1>
    %11 = vector.broadcast %10 : vector<8x288xi1> to vector<8x288xi1>
    %12 = arith.xori %8, %11 : vector<8x288xi1>
    %13 = arith.andi %12, %6 : vector<8x288xi1>
    %14 = vector.broadcast %2 : i32 to vector<8x288xi32>
    %15 = arith.addi %4, %14 : vector<8x288xi32>
    %16 = arith.select %13, %15, %4 : vector<8x288xi1>, vector<8x288xi32>
    %c16_i32 = arith.constant 16 : i32
    %17 = vector.broadcast %c16_i32 : i32 to vector<8x288xi32>
    %18 = arith.cmpi slt, %16, %17 : vector<8x288xi32>
    %c0 = arith.constant 0 : index
    %c0_3 = arith.constant 0 : index
    %19 = vector.load %arg3[%c0, %c0_3] : memref<8x1xf32, #tpu.memory_space<vmem>>, vector<8x1xf32>
    %c0_4 = arith.constant 0 : index
    %c0_5 = arith.constant 0 : index
    %20 = vector.load %arg4[%c0_4, %c0_5] : memref<8x1xf32, #tpu.memory_space<vmem>>, vector<8x1xf32>
    %c0_6 = arith.constant 0 : index
    %c0_7 = arith.constant 0 : index
    %c0_8 = arith.constant 0 : index
    %21 = vector.load %arg1[%c0_6, %c0_7, %c0_8] : memref<1x4x384xf32, #tpu.memory_space<vmem>>, vector<1x4x384xf32>
    %22 = vector.shape_cast %21 : vector<1x4x384xf32> to vector<4x384xf32>
    %cst = arith.constant 0.000000e+00 : f32
    %23 = vector.broadcast %cst : f32 to vector<8x288xf32>
    %24 = vector.extract_strided_slice %22 {offsets = [0, 0], sizes = [4, 288], strides = [1, 1]} : vector<4x384xf32> to vector<4x288xf32>
    %c0_9 = arith.constant 0 : index
    %c0_10 = arith.constant 0 : index
    %c0_11 = arith.constant 0 : index
    %25 = vector.load %arg2[%c0_9, %c0_10, %c0_11] : memref<9x8x4xf32, #tpu.memory_space<vmem>>, vector<1x8x4xf32>
    %26 = vector.shape_cast %25 : vector<1x8x4xf32> to vector<8x4xf32>
    %cst_12 = arith.constant dense<0.000000e+00> : vector<8x288xf32>
    %27 = tpu.matmul %26, %24, %cst_12 {dimension_numbers = #tpu.dot_dimension_numbers<[1], [0], [0], [1], [0, 0, 1, 1], [], []>} : vector<8x4xf32>, vector<4x288xf32>, vector<8x288xf32> -> vector<8x288xf32>
    %28 = arith.addf %23, %27 : vector<8x288xf32>
    %29 = vector.extract_strided_slice %22 {offsets = [0, 1], sizes = [4, 288], strides = [1, 1]} : vector<4x384xf32> to vector<4x288xf32>
    %c1 = arith.constant 1 : index
    %c0_13 = arith.constant 0 : index
    %c0_14 = arith.constant 0 : index
    %30 = vector.load %arg2[%c1, %c0_13, %c0_14] : memref<9x8x4xf32, #tpu.memory_space<vmem>>, vector<1x8x4xf32>
    %31 = vector.shape_cast %30 : vector<1x8x4xf32> to vector<8x4xf32>
    %cst_15 = arith.constant dense<0.000000e+00> : vector<8x288xf32>
    %32 = tpu.matmul %31, %29, %cst_15 {dimension_numbers = #tpu.dot_dimension_numbers<[1], [0], [0], [1], [0, 0, 1, 1], [], []>} : vector<8x4xf32>, vector<4x288xf32>, vector<8x288xf32> -> vector<8x288xf32>
    %33 = arith.addf %28, %32 : vector<8x288xf32>
    %34 = vector.extract_strided_slice %22 {offsets = [0, 2], sizes = [4, 288], strides = [1, 1]} : vector<4x384xf32> to vector<4x288xf32>
    %c2 = arith.constant 2 : index
    %c0_16 = arith.constant 0 : index
    %c0_17 = arith.constant 0 : index
    %35 = vector.load %arg2[%c2, %c0_16, %c0_17] : memref<9x8x4xf32, #tpu.memory_space<vmem>>, vector<1x8x4xf32>
    %36 = vector.shape_cast %35 : vector<1x8x4xf32> to vector<8x4xf32>
    %cst_18 = arith.constant dense<0.000000e+00> : vector<8x288xf32>
    %37 = tpu.matmul %36, %34, %cst_18 {dimension_numbers = #tpu.dot_dimension_numbers<[1], [0], [0], [1], [0, 0, 1, 1], [], []>} : vector<8x4xf32>, vector<4x288xf32>, vector<8x288xf32> -> vector<8x288xf32>
    %38 = arith.addf %33, %37 : vector<8x288xf32>
    %39 = vector.extract_strided_slice %22 {offsets = [0, 18], sizes = [4, 288], strides = [1, 1]} : vector<4x384xf32> to vector<4x288xf32>
    %c3 = arith.constant 3 : index
    %c0_19 = arith.constant 0 : index
    %c0_20 = arith.constant 0 : index
    %40 = vector.load %arg2[%c3, %c0_19, %c0_20] : memref<9x8x4xf32, #tpu.memory_space<vmem>>, vector<1x8x4xf32>
    %41 = vector.shape_cast %40 : vector<1x8x4xf32> to vector<8x4xf32>
    %cst_21 = arith.constant dense<0.000000e+00> : vector<8x288xf32>
    %42 = tpu.matmul %41, %39, %cst_21 {dimension_numbers = #tpu.dot_dimension_numbers<[1], [0], [0], [1], [0, 0, 1, 1], [], []>} : vector<8x4xf32>, vector<4x288xf32>, vector<8x288xf32> -> vector<8x288xf32>
    %43 = arith.addf %38, %42 : vector<8x288xf32>
    %44 = vector.extract_strided_slice %22 {offsets = [0, 19], sizes = [4, 288], strides = [1, 1]} : vector<4x384xf32> to vector<4x288xf32>
    %c4 = arith.constant 4 : index
    %c0_22 = arith.constant 0 : index
    %c0_23 = arith.constant 0 : index
    %45 = vector.load %arg2[%c4, %c0_22, %c0_23] : memref<9x8x4xf32, #tpu.memory_space<vmem>>, vector<1x8x4xf32>
    %46 = vector.shape_cast %45 : vector<1x8x4xf32> to vector<8x4xf32>
    %cst_24 = arith.constant dense<0.000000e+00> : vector<8x288xf32>
    %47 = tpu.matmul %46, %44, %cst_24 {dimension_numbers = #tpu.dot_dimension_numbers<[1], [0], [0], [1], [0, 0, 1, 1], [], []>} : vector<8x4xf32>, vector<4x288xf32>, vector<8x288xf32> -> vector<8x288xf32>
    %48 = arith.addf %43, %47 : vector<8x288xf32>
    %49 = vector.extract_strided_slice %22 {offsets = [0, 20], sizes = [4, 288], strides = [1, 1]} : vector<4x384xf32> to vector<4x288xf32>
    %c5 = arith.constant 5 : index
    %c0_25 = arith.constant 0 : index
    %c0_26 = arith.constant 0 : index
    %50 = vector.load %arg2[%c5, %c0_25, %c0_26] : memref<9x8x4xf32, #tpu.memory_space<vmem>>, vector<1x8x4xf32>
    %51 = vector.shape_cast %50 : vector<1x8x4xf32> to vector<8x4xf32>
    %cst_27 = arith.constant dense<0.000000e+00> : vector<8x288xf32>
    %52 = tpu.matmul %51, %49, %cst_27 {dimension_numbers = #tpu.dot_dimension_numbers<[1], [0], [0], [1], [0, 0, 1, 1], [], []>} : vector<8x4xf32>, vector<4x288xf32>, vector<8x288xf32> -> vector<8x288xf32>
    %53 = arith.addf %48, %52 : vector<8x288xf32>
    %54 = vector.extract_strided_slice %22 {offsets = [0, 36], sizes = [4, 288], strides = [1, 1]} : vector<4x384xf32> to vector<4x288xf32>
    %c6 = arith.constant 6 : index
    %c0_28 = arith.constant 0 : index
    %c0_29 = arith.constant 0 : index
    %55 = vector.load %arg2[%c6, %c0_28, %c0_29] : memref<9x8x4xf32, #tpu.memory_space<vmem>>, vector<1x8x4xf32>
    %56 = vector.shape_cast %55 : vector<1x8x4xf32> to vector<8x4xf32>
    %cst_30 = arith.constant dense<0.000000e+00> : vector<8x288xf32>
    %57 = tpu.matmul %56, %54, %cst_30 {dimension_numbers = #tpu.dot_dimension_numbers<[1], [0], [0], [1], [0, 0, 1, 1], [], []>} : vector<8x4xf32>, vector<4x288xf32>, vector<8x288xf32> -> vector<8x288xf32>
    %58 = arith.addf %53, %57 : vector<8x288xf32>
    %59 = vector.extract_strided_slice %22 {offsets = [0, 37], sizes = [4, 288], strides = [1, 1]} : vector<4x384xf32> to vector<4x288xf32>
    %c7 = arith.constant 7 : index
    %c0_31 = arith.constant 0 : index
    %c0_32 = arith.constant 0 : index
    %60 = vector.load %arg2[%c7, %c0_31, %c0_32] : memref<9x8x4xf32, #tpu.memory_space<vmem>>, vector<1x8x4xf32>
    %61 = vector.shape_cast %60 : vector<1x8x4xf32> to vector<8x4xf32>
    %cst_33 = arith.constant dense<0.000000e+00> : vector<8x288xf32>
    %62 = tpu.matmul %61, %59, %cst_33 {dimension_numbers = #tpu.dot_dimension_numbers<[1], [0], [0], [1], [0, 0, 1, 1], [], []>} : vector<8x4xf32>, vector<4x288xf32>, vector<8x288xf32> -> vector<8x288xf32>
    %63 = arith.addf %58, %62 : vector<8x288xf32>
    %64 = vector.extract_strided_slice %22 {offsets = [0, 38], sizes = [4, 288], strides = [1, 1]} : vector<4x384xf32> to vector<4x288xf32>
    %c8 = arith.constant 8 : index
    %c0_34 = arith.constant 0 : index
    %c0_35 = arith.constant 0 : index
    %65 = vector.load %arg2[%c8, %c0_34, %c0_35] : memref<9x8x4xf32, #tpu.memory_space<vmem>>, vector<1x8x4xf32>
    %66 = vector.shape_cast %65 : vector<1x8x4xf32> to vector<8x4xf32>
    %cst_36 = arith.constant dense<0.000000e+00> : vector<8x288xf32>
    %67 = tpu.matmul %66, %64, %cst_36 {dimension_numbers = #tpu.dot_dimension_numbers<[1], [0], [0], [1], [0, 0, 1, 1], [], []>} : vector<8x4xf32>, vector<4x288xf32>, vector<8x288xf32> -> vector<8x288xf32>
    %68 = arith.addf %63, %67 : vector<8x288xf32>
    %69 = vector.broadcast %19 : vector<8x1xf32> to vector<8x288xf32>
    %70 = arith.mulf %68, %69 : vector<8x288xf32>
    %71 = vector.broadcast %20 : vector<8x1xf32> to vector<8x288xf32>
    %72 = arith.addf %70, %71 : vector<8x288xf32>
    %73 = arith.negf %72 : vector<8x288xf32>
    %74 = math.exp %73 : vector<8x288xf32>
    %cst_37 = arith.constant 1.000000e+00 : f32
    %75 = vector.broadcast %cst_37 : f32 to vector<8x288xf32>
    %76 = arith.addf %75, %74 : vector<8x288xf32>
    %77 = arith.divf %75, %76 : vector<8x288xf32>
    %cst_38 = arith.constant -1.000000e+00 : f32
    %78 = vector.broadcast %cst_38 : f32 to vector<8x288xf32>
    %79 = arith.select %18, %77, %78 : vector<8x288xi1>, vector<8x288xf32>
    %cst_39 = arith.constant dense<0xFF800000> : vector<8xf32>
    %80 = vector.multi_reduction <maximumf>, %79, %cst_39 [1] : vector<8x288xf32> to vector<8xf32>
    %81 = vector.shape_cast %80 : vector<8xf32> to vector<8x1xf32>
    %cst_40 = arith.constant 2.000000e+00 : f32
    %82 = vector.broadcast %cst_40 : f32 to vector<8x288xf32>
    %83 = arith.select %18, %77, %82 : vector<8x288xi1>, vector<8x288xf32>
    %cst_41 = arith.constant dense<0x7F800000> : vector<8xf32>
    %84 = vector.multi_reduction <minimumf>, %83, %cst_41 [1] : vector<8x288xf32> to vector<8xf32>
    %85 = vector.shape_cast %84 : vector<8xf32> to vector<8x1xf32>
    %c0_42 = arith.constant 0 : index
    %c0_43 = arith.constant 0 : index
    %c0_44 = arith.constant 0 : index
    %86 = vector.load %arg5[%c0_42, %c0_43, %c0_44] : memref<4x8x8xf32, #tpu.memory_space<vmem>>, vector<1x8x8xf32>
    %87 = vector.shape_cast %86 : vector<1x8x8xf32> to vector<8x8xf32>
    %c0_45 = arith.constant 0 : index
    %c0_46 = arith.constant 0 : index
    %c0_47 = arith.constant 0 : index
    %88 = vector.load %arg6[%c0_45, %c0_46, %c0_47] : memref<2x1x8xf32, #tpu.memory_space<vmem>>, vector<1x1x8xf32>
    %89 = vector.shape_cast %88 : vector<1x1x8xf32> to vector<1x8xf32>
    %c1_48 = arith.constant 1 : index
    %c0_49 = arith.constant 0 : index
    %c0_50 = arith.constant 0 : index
    %90 = vector.load %arg5[%c1_48, %c0_49, %c0_50] : memref<4x8x8xf32, #tpu.memory_space<vmem>>, vector<1x8x8xf32>
    %91 = vector.shape_cast %90 : vector<1x8x8xf32> to vector<8x8xf32>
    %c0_51 = arith.constant 0 : index
    %c0_52 = arith.constant 0 : index
    %c0_53 = arith.constant 0 : index
    %92 = vector.load %arg7[%c0_51, %c0_52, %c0_53] : memref<2x8x1xf32, #tpu.memory_space<vmem>>, vector<1x8x1xf32>
    %93 = vector.shape_cast %92 : vector<1x8x1xf32> to vector<8x1xf32>
    %94 = vector.broadcast %81 : vector<8x1xf32> to vector<8x8xf32>
    %95 = arith.mulf %87, %94 : vector<8x8xf32>
    %cst_54 = arith.constant dense<0.000000e+00> : vector<8xf32>
    %96 = vector.multi_reduction <add>, %95, %cst_54 [0] : vector<8x8xf32> to vector<8xf32>
    %97 = vector.shape_cast %96 : vector<8xf32> to vector<1x8xf32>
    %98 = arith.addf %97, %89 : vector<1x8xf32>
    %cst_55 = arith.constant 0.000000e+00 : f32
    %99 = vector.broadcast %cst_55 : f32 to vector<1x8xf32>
    %100 = arith.maximumf %98, %99 : vector<1x8xf32>
    %101 = vector.broadcast %100 : vector<1x8xf32> to vector<8x8xf32>
    %102 = arith.mulf %91, %101 : vector<8x8xf32>
    %cst_56 = arith.constant dense<0.000000e+00> : vector<8xf32>
    %103 = vector.multi_reduction <add>, %102, %cst_56 [1] : vector<8x8xf32> to vector<8xf32>
    %104 = vector.shape_cast %103 : vector<8xf32> to vector<8x1xf32>
    %105 = arith.addf %104, %93 : vector<8x1xf32>
    %106 = arith.negf %105 : vector<8x1xf32>
    %107 = math.exp %106 : vector<8x1xf32>
    %cst_57 = arith.constant 1.000000e+00 : f32
    %108 = vector.broadcast %cst_57 : f32 to vector<8x1xf32>
    %109 = arith.addf %108, %107 : vector<8x1xf32>
    %110 = arith.divf %108, %109 : vector<8x1xf32>
    %c2_58 = arith.constant 2 : index
    %c0_59 = arith.constant 0 : index
    %c0_60 = arith.constant 0 : index
    %111 = vector.load %arg5[%c2_58, %c0_59, %c0_60] : memref<4x8x8xf32, #tpu.memory_space<vmem>>, vector<1x8x8xf32>
    %112 = vector.shape_cast %111 : vector<1x8x8xf32> to vector<8x8xf32>
    %c1_61 = arith.constant 1 : index
    %c0_62 = arith.constant 0 : index
    %c0_63 = arith.constant 0 : index
    %113 = vector.load %arg6[%c1_61, %c0_62, %c0_63] : memref<2x1x8xf32, #tpu.memory_space<vmem>>, vector<1x1x8xf32>
    %114 = vector.shape_cast %113 : vector<1x1x8xf32> to vector<1x8xf32>
    %c3_64 = arith.constant 3 : index
    %c0_65 = arith.constant 0 : index
    %c0_66 = arith.constant 0 : index
    %115 = vector.load %arg5[%c3_64, %c0_65, %c0_66] : memref<4x8x8xf32, #tpu.memory_space<vmem>>, vector<1x8x8xf32>
    %116 = vector.shape_cast %115 : vector<1x8x8xf32> to vector<8x8xf32>
    %c1_67 = arith.constant 1 : index
    %c0_68 = arith.constant 0 : index
    %c0_69 = arith.constant 0 : index
    %117 = vector.load %arg7[%c1_67, %c0_68, %c0_69] : memref<2x8x1xf32, #tpu.memory_space<vmem>>, vector<1x8x1xf32>
    %118 = vector.shape_cast %117 : vector<1x8x1xf32> to vector<8x1xf32>
    %119 = vector.broadcast %85 : vector<8x1xf32> to vector<8x8xf32>
    %120 = arith.mulf %112, %119 : vector<8x8xf32>
    %cst_70 = arith.constant dense<0.000000e+00> : vector<8xf32>
    %121 = vector.multi_reduction <add>, %120, %cst_70 [0] : vector<8x8xf32> to vector<8xf32>
    %122 = vector.shape_cast %121 : vector<8xf32> to vector<1x8xf32>
    %123 = arith.addf %122, %114 : vector<1x8xf32>
    %cst_71 = arith.constant 0.000000e+00 : f32
    %124 = vector.broadcast %cst_71 : f32 to vector<1x8xf32>
    %125 = arith.maximumf %123, %124 : vector<1x8xf32>
    %126 = vector.broadcast %125 : vector<1x8xf32> to vector<8x8xf32>
    %127 = arith.mulf %116, %126 : vector<8x8xf32>
    %cst_72 = arith.constant dense<0.000000e+00> : vector<8xf32>
    %128 = vector.multi_reduction <add>, %127, %cst_72 [1] : vector<8x8xf32> to vector<8xf32>
    %129 = vector.shape_cast %128 : vector<8xf32> to vector<8x1xf32>
    %130 = arith.addf %129, %118 : vector<8x1xf32>
    %131 = arith.negf %130 : vector<8x1xf32>
    %132 = math.exp %131 : vector<8x1xf32>
    %cst_73 = arith.constant 1.000000e+00 : f32
    %133 = vector.broadcast %cst_73 : f32 to vector<8x1xf32>
    %134 = arith.addf %133, %132 : vector<8x1xf32>
    %135 = arith.divf %133, %134 : vector<8x1xf32>
    %136 = arith.subf %110, %135 : vector<8x1xf32>
    %cst_74 = arith.constant 9.99999974E-6 : f32
    %137 = vector.broadcast %cst_74 : f32 to vector<8x1xf32>
    %138 = arith.maximumf %136, %137 : vector<8x1xf32>
    %cst_75 = arith.constant 1.000000e+00 : f32
    %139 = vector.broadcast %cst_75 : f32 to vector<8x1xf32>
    %140 = arith.divf %139, %138 : vector<8x1xf32>
    %141 = vector.broadcast %135 : vector<8x1xf32> to vector<8x288xf32>
    %142 = arith.subf %77, %141 : vector<8x288xf32>
    %143 = vector.broadcast %140 : vector<8x1xf32> to vector<8x288xf32>
    %144 = arith.mulf %142, %143 : vector<8x288xf32>
    %cst_76 = arith.constant 0.000000e+00 : f32
    %cst_77 = arith.constant 1.000000e+00 : f32
    %145 = vector.broadcast %cst_76 : f32 to vector<8x288xf32>
    %146 = arith.maximumf %145, %144 : vector<8x288xf32>
    %147 = vector.broadcast %cst_77 : f32 to vector<8x288xf32>
    %148 = arith.minimumf %147, %146 : vector<8x288xf32>
    %c0_78 = arith.constant 0 : index
    %c0_79 = arith.constant 0 : index
    %c0_80 = arith.constant 0 : index
    %149 = vector.load %arg8[%c0_78, %c0_79, %c0_80] : memref<1x8x288xf32, #tpu.memory_space<vmem>>, vector<1x8x288xf32>
    %150 = vector.shape_cast %149 : vector<1x8x288xf32> to vector<8x288xf32>
    %151 = vector.shape_cast %148 : vector<8x288xf32> to vector<1x8x288xf32>
    tpu.vector_store %arg8[%c0_78, %c0_79, %c0_80], %151 {strides = array<i32>} : memref<1x8x288xf32, #tpu.memory_space<vmem>>, vector<1x8x288xf32>,
    return
  }
  func.func @transform_0(%arg0: i32) -> (i32, i32, i32) {
    %c0_i32 = arith.constant 0 : i32
    %c0_i32_0 = arith.constant 0 : i32
    %c0_i32_1 = arith.constant 0 : i32
    return %arg0, %c0_i32, %c0_i32_0 : i32, i32, i32
  }
  func.func @transform_1(%arg0: i32) -> (i32, i32, i32) {
    %c0_i32 = arith.constant 0 : i32
    %c0_i32_0 = arith.constant 0 : i32
    %c0_i32_1 = arith.constant 0 : i32
    %c0_i32_2 = arith.constant 0 : i32
    return %c0_i32, %c0_i32_0, %c0_i32_1 : i32, i32, i32
  }
  func.func @transform_2(%arg0: i32) -> (i32, i32) {
    %c0_i32 = arith.constant 0 : i32
    %c0_i32_0 = arith.constant 0 : i32
    %c0_i32_1 = arith.constant 0 : i32
    return %c0_i32, %c0_i32_0 : i32, i32
  }
  func.func @transform_3(%arg0: i32) -> (i32, i32) {
    %c0_i32 = arith.constant 0 : i32
    %c0_i32_0 = arith.constant 0 : i32
    %c0_i32_1 = arith.constant 0 : i32
    return %c0_i32, %c0_i32_0 : i32, i32
  }
  func.func @transform_4(%arg0: i32) -> (i32, i32, i32) {
    %c0_i32 = arith.constant 0 : i32
    %c0_i32_0 = arith.constant 0 : i32
    %c0_i32_1 = arith.constant 0 : i32
    %c0_i32_2 = arith.constant 0 : i32
    return %c0_i32, %c0_i32_0, %c0_i32_1 : i32, i32, i32
  }
  func.func @transform_5(%arg0: i32) -> (i32, i32, i32) {
    %c0_i32 = arith.constant 0 : i32
    %c0_i32_0 = arith.constant 0 : i32
    %c0_i32_1 = arith.constant 0 : i32
    %c0_i32_2 = arith.constant 0 : i32
    return %c0_i32, %c0_i32_0, %c0_i32_1 : i32, i32, i32
  }
  func.func @transform_6(%arg0: i32) -> (i32, i32, i32) {
    %c0_i32 = arith.constant 0 : i32
    %c0_i32_0 = arith.constant 0 : i32
    %c0_i32_1 = arith.constant 0 : i32
    %c0_i32_2 = arith.constant 0 : i32
    return %c0_i32, %c0_i32_0, %c0_i32_1 : i32, i32, i32
  }
  func.func @transform_7(%arg0: i32) -> (i32, i32, i32) {
    %c0_i32 = arith.constant 0 : i32
    %c0_i32_0 = arith.constant 0 : i32
    %c0_i32_1 = arith.constant 0 : i32
    return %arg0, %c0_i32, %c0_i32_0 : i32, i32, i32
  }
}

</mosaic_0001>

<bundles_post_ra>
// kernel: drs_forward.1
= control target key start
LH: loop header
LB: loop body
LE: loop exit
PB: predicated region body
PF: predicated region fallthrough
CT: control target
= control target key end

     0   :  { %s1634_s24 = smov 0   ;;  %s1926_s0 = inlined_call_operand.vmem [shape: f32[2,4,384], index: 0, kind: input, shape index: {}]   ;;  %s1927_s1 = inlined_call_operand.vmem [shape: f32[9,8,4], index: 1, kind: input, shape index: {}]   ;;  %s1928_s2 = inlined_call_operand.vmem [shape: f32[8,1], index: 2, kind: input, shape index: {}]   ;;  %s1929_s3 = inlined_call_operand.vmem [shape: f32[8,1], index: 3, kind: input, shape index: {}]   ;;  %s1930_s4 = inlined_call_operand.vmem [shape: f32[4,8,8], index: 4, kind: input, shape index: {}]   ;;  %s1931_s5 = inlined_call_operand.vmem [shape: f32[2,1,8], index: 5, kind: input, shape index: {}]   ;;  %s1932_s6 = inlined_call_operand.vmem [shape: f32[2,8,1], index: 6, kind: input, shape index: {}]   ;;  %s1933_s7 = inlined_call_operand.vmem [shape: f32[2,8,288], index: 7, kind: output, shape index: {}]  }
   0x1 LB: > { %s1452_s25 = sadd.s32 4294967295, %s1583_s24   ;;  %p1456_p0 = scmp.ge.s32.totalorder %s1583_s24, 1  ;;  %s1583_s24 = sphi %s1634_s24, %s17_s24  }
   0x2   : > { %p237_p1 = scmp.lt.s32.totalorder %s1583_s24, 3 }
   0x4   : > { %p238_p2 = pnand %p1456_p0, %p237_p1 }
   0x5   : > { %p269_p3 = scmp.lt.s32.totalorder (!%p238_p2), %s1452_s25, 1  ;;  %s1585_s30 = smov (!%p238_p2), 127  }
   0x6   : > { %241 = sbr.rel (%p238_p2) target bundleno = 810 (0x32a), region = 48  ;;  %s1586_s8 = smov (!%p238_p2), 126  }
   0x7   : > { %s1587_s9 = smov (!%p238_p2), 110   ;;  %s1588_s10 = smov (!%p238_p2), 109  }
   0x8   : > { %s1589_s11 = smov (!%p238_p2), 108   ;;  %s1590_s12 = smov (!%p238_p2), 92  }
   0x9   : > { %s1591_s13 = smov (!%p238_p2), 91   ;;  %s1592_s14 = smov (!%p238_p2), 90  }
   0xb   : > { %s1949_s25 = smov (!%p269_p3, %s1452_s25), 1  ;;  %vm416_vm0 = vcmask 1043456   ;;  %vm412_vm1 = vcmask 31744   ;;  %v392_v29 = vld [vmem:[%s1927_s1] sm:$0xff]  ;;  %vm409_vm2 = vcmask 1039360   ;;  %v1459_v31 = vld [vmem:[%s1927_s1 + $0x8] sm:$0xff] }
   0xc   : > { %s1533_s26 = smul.u32 12, %s1949_s25  ;;  %vm572_vm3 = vcmask 1031168   ;;  %v1472_v36 = vld [vmem:[%s1927_s1 + $0x10] sm:$0xff]  ;;  %vm661_vm4 = vcmask 900096   ;;  %v1479_v46 = vld [vmem:[%s1927_s1 + $0x18] sm:$0xff]  ;;  %vm750_vm5 = vcmask 891904  }
   0xd   : > { %v1486_v52 = vld [vmem:[%s1927_s1 + $0x20] sm:$0xff]  ;;  %v1593_v57 = vmov 0   ;;  %vm839_vm6 = vcmask 883712   ;;  %v1493_v60 = vld [vmem:[%s1927_s1 + $0x28] sm:$0xff]  ;;  %vm928_vm7 = vcmask 752640   ;;  %vm1017_vm8 = vcmask 744448  }
   0xe   : > { %s273_s29 = scalar_lea.vmem %s1926_s0, %s1533_s26  ;;  %v388_v55 = vld [vmem:[%s1928_s2] sm:$0xff]  ;;  %1552 = vset.pattern.permute.xlu0 %v1593_v57  ;;  %1553 = vset.pattern.permute.xlu1 %v1593_v57  ;;  %vm1106_vm9 = vcmask 736256  }
   0xf   : > { %v391_v0 = vld [vmem:[%s273_s29 + $0x8] sm:$0xf]  ;;  %v1648_v1 = vld [vmem:[%s273_s29] sm:$0xff]  ;;  %1554 = vset.pattern.permute.xlu2 %v1593_v57 }
  0x10   : > { %399 = vst [vmem:[#allocation1 + $0x10] ss:$2 sm:$0xff] %v391_v0  ;;  %v389_v56 = vld [vmem:[%s1929_s3] sm:$0xff] }
  0x11   : > { %397 = vst [vmem:[#allocation1] ss:$2 sm:$0xff] %v1648_v1 }
  0x17   : > { %v402_v2 = vld.sshfl [vmem:[#allocation1 + $0x10] sm:$0xff pattern:$0x75316420] }
  0x18   : > { %407 = vrot.lane.b32.xlu0 %v402_v2, %s1585_s30  ;;  %485 = vst [vmem:[#allocation1 + $0x10] ss:$2 sm:$0xff] %v391_v0  ;;  %v401_v3 = vld.sshfl [vmem:[#allocation1 + $0x8] sm:$0xff pattern:$0x75316420] }
  0x19   : > { %405 = vrot.lane.b32.xlu1 %v401_v3, %s1585_s30  ;;  %v400_v4 = vld.sshfl [vmem:[#allocation1] sm:$0xff pattern:$0x75316420] }
  0x1a   : > { %483 = vst [vmem:[#allocation1] ss:$2 sm:$0xff] %v1648_v1 }
  0x1f   : > { %v1652_v5 = vld.sshfl [vmem:[#allocation1 + $0x10] sm:$0xff pattern:$0x75316420] }
  0x20   : > { %403 = vrot.lane.b32.xlu0 %v400_v4, %s1585_s30  ;;  %562 = vst [vmem:[#allocation1 + $0x10] ss:$2 sm:$0xff] %v391_v0  ;;  %v1500_v4 = vld [vmem:[%s1927_s1 + $0x30] sm:$0xff] }
  0x21   : > { %v1654_v6 = vld.sshfl [vmem:[#allocation1] sm:$0xff pattern:$0x75316420]  ;;  %v1656_v7 = vld.sshfl [vmem:[#allocation1 + $0x8] sm:$0xff pattern:$0x75316420] }
  0x22   : > { %560 = vst [vmem:[#allocation1] ss:$2 sm:$0xff] %v1648_v1  ;;  %1466 = vmatpush.msk.msra.mxu3 %vm416_vm0, %v1654_v6 }
  0x23   : > { %1467 = vmatmul.msk.f32.vlgmr.msra.gmra.mxu3 %vm412_vm1, %v392_v29 }
  0x27   : > { %v565_v8 = vld.sshfl [vmem:[#allocation1 + $0x10] sm:$0xff pattern:$0x75316420] }
  0x28   : > { %651 = vst [vmem:[#allocation1 + $0x10] ss:$2 sm:$0xff] %v391_v0 }
  0x29   : > { %v563_v9 = vld.sshfl [vmem:[#allocation1] sm:$0xff pattern:$0x75316420]  ;;  %v564_v10 = vld.sshfl [vmem:[#allocation1 + $0x8] sm:$0xff pattern:$0x75316420] }
  0x2a   : > { %566 = vrot.lane.b32.xlu1 %v563_v9, %s1586_s8  ;;  %649 = vst [vmem:[#allocation1] ss:$2 sm:$0xff] %v1648_v1  ;;  %568 = vrot.lane.b32.xlu2 %v564_v10, %s1586_s8 }
  0x2f   : > { %v654_v11 = vld.sshfl [vmem:[#allocation1 + $0x10] sm:$0xff pattern:$0x75316420] }
  0x30   : > { %740 = vst [vmem:[#allocation1 + $0x10] ss:$2 sm:$0xff] %v391_v0 }
  0x31   : > { %v653_v12 = vld.sshfl [vmem:[#allocation1 + $0x8] sm:$0xff pattern:$0x75316420]  ;;  %v652_v13 = vld.sshfl [vmem:[#allocation1] sm:$0xff pattern:$0x75316420] }
  0x32   : > { %659 = vrot.lane.b32.xlu1 %v654_v11, %s1587_s9  ;;  %657 = vrot.lane.b32.xlu0 %v653_v12, %s1587_s9  ;;  %738 = vst [vmem:[#allocation1] ss:$2 sm:$0xff] %v1648_v1 }
  0x33   : > { %570 = vrot.lane.b32.xlu2 %v565_v8, %s1586_s8  ;;  %v1507_v8 = vld [vmem:[%s1927_s1 + $0x38] sm:$0xff] }
  0x37   : > { %v743_v14 = vld.sshfl [vmem:[#allocation1 + $0x10] sm:$0xff pattern:$0x75316420] }
  0x38   : > { %829 = vst [vmem:[#allocation1 + $0x10] ss:$2 sm:$0xff] %v391_v0 }
  0x39   : > { %v742_v15 = vld.sshfl [vmem:[#allocation1 + $0x8] sm:$0xff pattern:$0x75316420]  ;;  %v741_v16 = vld.sshfl [vmem:[#allocation1] sm:$0xff pattern:$0x75316420] }
  0x3a   : > { %748 = vrot.lane.b32.xlu0 %v743_v14, %s1588_s10  ;;  %744 = vrot.lane.b32.xlu1 %v741_v16, %s1588_s10  ;;  %827 = vst [vmem:[#allocation1] ss:$2 sm:$0xff] %v1648_v1  ;;  %v1514_v14 = vld [vmem:[%s1927_s1 + $0x40] sm:$0xff] }
  0x3b   : > { %655 = vrot.lane.b32.xlu2 %v652_v13, %s1587_s9 }
  0x3f   : > { %v832_v17 = vld.sshfl [vmem:[#allocation1 + $0x10] sm:$0xff pattern:$0x75316420] }
  0x40   : > { %918 = vst [vmem:[#allocation1 + $0x10] ss:$2 sm:$0xff] %v391_v0 }
  0x41   : > { %v831_v18 = vld.sshfl [vmem:[#allocation1 + $0x8] sm:$0xff pattern:$0x75316420]  ;;  %v830_v19 = vld.sshfl [vmem:[#allocation1] sm:$0xff pattern:$0x75316420] }
  0x42   : > { %835 = vrot.lane.b32.xlu1 %v831_v18, %s1589_s11  ;;  %833 = vrot.lane.b32.xlu0 %v830_v19, %s1589_s11  ;;  %916 = vst [vmem:[#allocation1] ss:$2 sm:$0xff] %v1648_v1 }
  0x43   : > { %746 = vrot.lane.b32.xlu2 %v742_v15, %s1588_s10 }
  0x47   : > { %v921_v20 = vld.sshfl [vmem:[#allocation1 + $0x10] sm:$0xff pattern:$0x75316420] }
  0x48   : > { %1007 = vst [vmem:[#allocation1 + $0x10] ss:$2 sm:$0xff] %v391_v0 }
  0x49   : > { %v920_v21 = vld.sshfl [vmem:[#allocation1 + $0x8] sm:$0xff pattern:$0x75316420]  ;;  %v919_v22 = vld.sshfl [vmem:[#allocation1] sm:$0xff pattern:$0x75316420] }
  0x4a   : > { %837 = vrot.lane.b32.xlu1 %v832_v17, %s1589_s11  ;;  %924 = vrot.lane.b32.xlu0 %v920_v21, %s1590_s12  ;;  %1005 = vst [vmem:[#allocation1] ss:$2 sm:$0xff] %v1648_v1  ;;  %s1534_s11 = smul.u32 24, %s1949_s25 }
  0x4b   : > { %922 = vrot.lane.b32.xlu2 %v919_v22, %s1590_s12 }
  0x4f   : > { %v1010_v23 = vld.sshfl [vmem:[#allocation1 + $0x10] sm:$0xff pattern:$0x75316420] }
  0x50   : > { %1096 = vst [vmem:[#allocation1 + $0x10] ss:$2 sm:$0xff] %v391_v0 }
  0x51   : > { %v1009_v24 = vld.sshfl [vmem:[#allocation1 + $0x8] sm:$0xff pattern:$0x75316420]  ;;  %v1008_v25 = vld.sshfl [vmem:[#allocation1] sm:$0xff pattern:$0x75316420] }
  0x52   : > { %1015 = vrot.lane.b32.xlu1 %v1010_v23, %s1591_s13  ;;  %1013 = vrot.lane.b32.xlu0 %v1009_v24, %s1591_s13  ;;  %1094 = vst [vmem:[#allocation1] ss:$2 sm:$0xff] %v1648_v1 }
  0x53   : > { %926 = vrot.lane.b32.xlu2 %v921_v20, %s1590_s12 }
  0x57   : > { %v1099_v26 = vld.sshfl [vmem:[#allocation1 + $0x10] sm:$0xff pattern:$0x75316420] }
  0x59   : > { %v1097_v27 = vld.sshfl [vmem:[#allocation1] sm:$0xff pattern:$0x75316420]  ;;  %v1098_v28 = vld.sshfl [vmem:[#allocation1 + $0x8] sm:$0xff pattern:$0x75316420] }
  0x5a   : > { %1104 = vrot.lane.b32.xlu0 %v1099_v26, %s1592_s14  ;;  %1100 = vrot.lane.b32.xlu1 %v1097_v27, %s1592_s14 }
  0x5b   : > { %1011 = vrot.lane.b32.xlu2 %v1008_v25, %s1591_s13 }
  0x62   : > { %1183 = vperm.xlu0 %1552, %v388_v55   ;;  %1191 = vperm.xlu1 %1553, %v389_v56  }
  0x63   : > { %1102 = vrot.lane.b32.xlu2 %v1098_v28, %s1592_s14  ;;  %v279_v28 = vlaneseq  ;;  %s278_s14 = scalar_lea.vmem %s1933_s7, %s1534_s11 }
  0x84   : > { %v569_v30 = vpop.permute.xlu2 %568 }
  0x8a   : > { %v408_v32 = vpop.permute.xlu0 %407 }
  0x8b   : > { %v406_v33 = vpop.permute.xlu1 %405  ;;  %1464 = vmatpush.msk.msra.mxu2 %vm416_vm0, %v408_v32 }
  0x8c   : > { %v411_v34 = vsel %vm409_vm2, %v406_v33, %v408_v32  ;;  %1465 = vmatmul.msk.f32.vlgmr.msra.gmra.mxu2 %vm412_vm1, %v1459_v31 }
  0x8d   : > { %1462 = vmatpush.msk.msra.mxu1 %vm416_vm0, %v411_v34  ;;  %v571_v35 = vpop.permute.xlu2 %570 }
  0x8e   : > { %1463 = vmatmul.msk.f32.vlgmr.msra.gmra.mxu1 %vm412_vm1, %v1459_v31  ;;  %v574_v37 = vsel %vm572_vm3, %v569_v30, %v571_v35 }
  0x8f   : > { %1475 = vmatpush.msk.msrb.mxu3 %vm416_vm0, %v574_v37  ;;  %1470 = vmatpush.msk.msrb.mxu1 %vm416_vm0, %v1652_v5 }
  0x90   : > { %1476 = vmatmul.msk.f32.vlgmr.msrb.gmra.mxu3 %vm412_vm1, %v1472_v36 }
  0x92   : > { %v404_v38 = vpop.permute.xlu0 %403 }
  0x93   : > { %v410_v39 = vsel %vm409_vm2, %v404_v38, %v406_v33 }
  0x94   : > { %1460 = vmatpush.msk.msra.mxu0 %vm416_vm0, %v410_v39 }
  0x95   : > { %1461 = vmatmul.msk.f32.vlgmr.msra.gmra.mxu0 %vm412_vm1, %v1459_v31  ;;  %v656_v40 = vpop.permute.xlu2 %655  ;;  %v1764_v31 = vand.u32 127, %v279_v28 }
  0x96   : > { %1468 = vmatpush.msk.msrb.mxu0 %vm416_vm0, %v1656_v7  ;;  %1471 = vmatmul.msk.f32.vlgmr.msrb.gmra.mxu1 %vm412_vm1, %v392_v29 }
  0x97   : > { %v1767_v33 = vadd.s32 128, %v1764_v31  ;;  %v286_v34 = vand.u32 65535, %v1764_v31 }
  0x98   : > { %1477 = vmatpush.msk.msra.mxu0 %vm416_vm0, %v571_v35 }
  0x99   : > { %v315_v35 = vand.u32 65535, %v1767_v33  ;;  %v1772_v37 = vmul.u32 58254, %v286_v34  ;;  %v316_v38 = vshrl.u32 %v1767_v33, 16 }
  0x9b   : > { %v1775_v39 = vmul.u32 58254, %v315_v35 }
  0x9c   : > { %v567_v41 = vpop.permute.xlu1 %566 }
  0x9d   : > { %v573_v42 = vsel %vm572_vm3, %v567_v41, %v569_v30  ;;  %1469 = vmatmul.msk.f32.vlgmr.msrb.gmra.mxu0 %vm412_vm1, %v392_v29  ;;  %v747_v43 = vpop.permute.xlu2 %746 }
  0x9e   : > { %1473 = vmatpush.msk.msrb.mxu2 %vm416_vm0, %v573_v42 }
  0x9f   : > { %1474 = vmatmul.msk.f32.vlgmr.msrb.gmra.mxu2 %vm412_vm1, %v1472_v36 }
  0xa4   : > { %v660_v44 = vpop.permute.xlu1 %659  ;;  %v658_v45 = vpop.permute.xlu0 %657 }
  0xa5   : > { %v663_v47 = vsel %vm661_vm4, %v658_v45, %v660_v44  ;;  %v662_v48 = vsel %vm661_vm4, %v656_v40, %v658_v45  ;;  %1484 = vmatpush.msk.msra.mxu3 %vm416_vm0, %v660_v44  ;;  %1478 = vmatmul.msk.f32.vlgmr.msra.gmra.mxu0 %vm412_vm1, %v1472_v36  ;;  %v923_v49 = vpop.permute.xlu2 %922  ;;  %v287_v36 = vshrl.u32 %v1764_v31, 16  ;;  %v1782_v44 = vadd.s32 256, %v1764_v31 }
  0xa6   : > { %1480 = vmatpush.msk.msra.mxu1 %vm416_vm0, %v662_v48  ;;  %1482 = vmatpush.msk.msra.mxu2 %vm416_vm0, %v663_v47  ;;  %v515_v20 = vpop.f32.mrf.mxu3  ;;  %v289_v45 = vmul.u32 14564, %v286_v34  ;;  %v293_v48 = vshll.u32 %v1772_v37, 16 }
  0xa7   : > { %1483 = vmatmul.msk.f32.vlgmr.msra.gmra.mxu2 %vm412_vm1, %v1479_v46  ;;  %1481 = vmatmul.msk.f32.vlgmr.msra.gmra.mxu1 %vm412_vm1, %v1479_v46  ;;  %v344_v56 = vand.u32 65535, %v1782_v44 }
  0xa8   : > { %1485 = vmatmul.msk.f32.vlgmr.msra.gmra.mxu3 %vm412_vm1, %v1479_v46  ;;  %v1784_v46 = vmul.u32 14564, %v287_v36  ;;  %vm297_vm10 = vc.u32 %v289_v45, %v293_v48  ;;  %v299_v55 = vadd.s32 %v293_v48, %v289_v45 }
  0xac   : > { %v749_v50 = vpop.permute.xlu0 %748  ;;  %v745_v51 = vpop.permute.xlu1 %744 }
  0xad   : > { %v752_v53 = vsel %vm750_vm5, %v747_v43, %v749_v50  ;;  %v751_v54 = vsel %vm750_vm5, %v745_v51, %v747_v43  ;;  %1491 = vmatpush.msk.msrb.mxu2 %vm416_vm0, %v749_v50  ;;  %v927_v62 = vpop.permute.xlu2 %926  ;;  %v318_v50 = vmul.u32 14564, %v315_v35  ;;  %v1787_v51 = vmul.u32 14564, %v316_v38 }
  0xae   : > { %1487 = vmatpush.msk.msrb.mxu0 %vm416_vm0, %v751_v54  ;;  %1489 = vmatpush.msk.msrb.mxu1 %vm416_vm0, %v752_v53  ;;  %v295_v54 = vshll.u32 %v1784_v46, 16 }
  0xaf   : > { %1492 = vmatmul.msk.f32.vlgmr.msrb.gmra.mxu2 %vm412_vm1, %v1486_v52  ;;  %1488 = vmatmul.msk.f32.vlgmr.msrb.gmra.mxu0 %vm412_vm1, %v1486_v52 }
  0xb0   : > { %1490 = vmatmul.msk.f32.vlgmr.msrb.gmra.mxu1 %vm412_vm1, %v1486_v52  ;;  %v322_v52 = vshll.u32 %v1775_v39, 16  ;;  %vm1797_vm12 = vc.u32 %v299_v55, %v295_v54 }
  0xb2   : > { %vm326_vm11 = vc.u32 %v318_v50, %v322_v52 }
  0xb4   : > { %v836_v58 = vpop.permute.xlu1 %835  ;;  %v834_v59 = vpop.permute.xlu0 %833 }
  0xb5   : > { %v840_v61 = vsel %vm839_vm6, %v834_v59, %v836_v58  ;;  %v1012_v5 = vpop.permute.xlu2 %1011 }
  0xb6   : > { %1494 = vmatpush.msk.msrb.mxu3 %vm416_vm0, %v840_v61  ;;  %v292_v61 = vmul.u32 58254, %v287_v36  ;;  %v323_v36 = vshrl.u32 %v1775_v39, 16 }
  0xb7   : > { %1495 = vmatmul.msk.f32.vlgmr.msrb.gmra.mxu3 %vm412_vm1, %v1493_v60 }
  0xbc   : > { %v838_v63 = vpop.permute.xlu1 %837  ;;  %v925_v0 = vpop.permute.xlu0 %924 }
  0xbd   : > { %v841_v1 = vsel %vm839_vm6, %v836_v58, %v838_v63  ;;  %v929_v2 = vsel %vm928_vm7, %v923_v49, %v925_v0  ;;  %v930_v3 = vsel %vm928_vm7, %v925_v0, %v927_v62  ;;  %1498 = vmatpush.msk.msra.mxu1 %vm416_vm0, %v838_v63  ;;  %v1103_v11 = vpop.permute.xlu2 %1102  ;;  %v328_v63 = vadd.s32 %v322_v52, %v318_v50 }
  0xbe   : > { %1496 = vmatpush.msk.msra.mxu0 %vm416_vm0, %v841_v1  ;;  %1499 = vmatmul.msk.f32.vlgmr.msra.gmra.mxu1 %vm412_vm1, %v1493_v60 }
  0xbf   : > { %1501 = vmatpush.msk.msra.mxu2 %vm416_vm0, %v929_v2  ;;  %1503 = vmatpush.msk.msra.mxu3 %vm416_vm0, %v930_v3  ;;  %v298_v2 = vsel %vm297_vm10, 1, %v1593_v57  ;;  %v1795_v3 = vmul.u32 58254, %v344_v56 }
  0xc0   : > { %1497 = vmatmul.msk.f32.vlgmr.msra.gmra.mxu0 %vm412_vm1, %v1493_v60  ;;  %1502 = vmatmul.msk.f32.vlgmr.msra.gmra.mxu2 %vm412_vm1, %v1500_v4  ;;  %v345_v60 = vshrl.u32 %v1782_v44, 16 }
  0xc1   : > { %1504 = vmatmul.msk.f32.vlgmr.msra.gmra.mxu3 %vm412_vm1, %v1500_v4  ;;  %1505 = vmatpush.msk.msrb.mxu0 %vm416_vm0, %v927_v62  ;;  %v324_v62 = vshll.u32 %v1787_v51, 16 }
  0xc3   : > { %vm330_vm13 = vc.u32 %v328_v63, %v324_v62 }
  0xc4   : > { %v1016_v6 = vpop.permute.xlu1 %1015  ;;  %v1014_v7 = vpop.permute.xlu0 %1013 }
  0xc5   : > { %v1019_v9 = vsel %vm1017_vm8, %v1014_v7, %v1016_v6  ;;  %v1018_v10 = vsel %vm1017_vm8, %v1012_v5, %v1014_v7  ;;  %1512 = vmatpush.msk.msrb.mxu3 %vm416_vm0, %v1016_v6  ;;  %v321_v6 = vmul.u32 58254, %v316_v38  ;;  %v347_v7 = vmul.u32 14564, %v344_v56 }
  0xc6   : > { %1508 = vmatpush.msk.msrb.mxu1 %vm416_vm0, %v1018_v10  ;;  %1510 = vmatpush.msk.msrb.mxu2 %vm416_vm0, %v1019_v9 }
  0xc7   : > { %1509 = vmatmul.msk.f32.vlgmr.msrb.gmra.mxu1 %vm412_vm1, %v1507_v8 }
  0xc8   : > { %1506 = vmatmul.msk.f32.vlgmr.msrb.gmra.mxu0 %vm412_vm1, %v1500_v4  ;;  %1511 = vmatmul.msk.f32.vlgmr.msrb.gmra.mxu2 %vm412_vm1, %v1507_v8 }
  0xc9   : > { %1513 = vmatmul.msk.f32.vlgmr.msrb.gmra.mxu3 %vm412_vm1, %v1507_v8  ;;  %v1801_v8 = vmul.u32 14564, %v345_v60 }
  0xcc   : > { %v1105_v12 = vpop.permute.xlu0 %1104  ;;  %v1101_v13 = vpop.permute.xlu1 %1100 }
  0xcd   : > { %v1108_v15 = vsel %vm1106_vm9, %v1103_v11, %v1105_v12  ;;  %v1107_v16 = vsel %vm1106_vm9, %v1101_v13, %v1103_v11  ;;  %1519 = vmatpush.msk.msra.mxu2 %vm416_vm0, %v1105_v12  ;;  %v327_v11 = vsel %vm326_vm11, 1, %v1593_v57 }
  0xce   : > { %1515 = vmatpush.msk.msra.mxu0 %vm416_vm0, %v1107_v16  ;;  %1517 = vmatpush.msk.msra.mxu1 %vm416_vm0, %v1108_v15  ;;  %v351_v15 = vshll.u32 %v1795_v3, 16  ;;  %v353_v16 = vshll.u32 %v1801_v8, 16 }
  0xcf   : > { %1518 = vmatmul.msk.f32.vlgmr.msra.gmra.mxu1 %vm412_vm1, %v1514_v14 }
  0xd0   : > { %1516 = vmatmul.msk.f32.vlgmr.msra.gmra.mxu0 %vm412_vm1, %v1514_v14  ;;  %1520 = vmatmul.msk.f32.vlgmr.msra.gmra.mxu2 %vm412_vm1, %v1514_v14  ;;  %v300_v14 = vadd.s32 %v298_v2, %v292_v61  ;;  %vm355_vm14 = vc.u32 %v347_v7, %v351_v15 }
  0xd1   : > { %v356_v28 = vsel %vm355_vm14, 1, %v1593_v57 }
  0xd4   : > { %v1184_v52 = vpop.permute.xlu0 %1183  ;;  %v1192_v39 = vpop.permute.xlu1 %1191 }
 0x10b   : > { %v460_v17 = vpop.f32.mrf.mxu1 }
 0x10f   : > { %v480_v19 = vpop.f32.mrf.mxu2 }
 0x112   : > { %v440_v18 = vpop.f32.mrf.mxu0 }
 0x113   : > { %v555_v21 = vpop.f32.mrf.mxu1  ;;  %v621_v24 = vpop.f32.mrf.mxu3  ;;  %v516_v40 = vadd.f32 %v515_v20, %v440_v18  ;;  %v302_v20 = vsel %vm1797_vm12, 1, %v1593_v57 }
 0x114   : > { %v556_v58 = vadd.f32 %v555_v21, %v480_v19  ;;  %v329_v21 = vadd.s32 %v327_v11, %v321_v6  ;;  %v304_v34 = vadd.s32 %v302_v20, %v300_v14 }
 0x11a   : > { %v535_v22 = vpop.f32.mrf.mxu0 }
 0x11b   : > { %v536_v47 = vadd.f32 %v535_v22, %v460_v17  ;;  %v350_v22 = vmul.u32 58254, %v345_v60 }
 0x11d   : > { %v645_v59 = vadd.f32 %v621_v24, %v536_v47 }
 0x122   : > { %v601_v23 = vpop.f32.mrf.mxu2  ;;  %v641_v26 = vpop.f32.mrf.mxu0 }
 0x123   : > { %v644_v53 = vadd.f32 %v601_v23, %v516_v40  ;;  %v646_v17 = vadd.f32 %v641_v26, %v556_v58  ;;  %v357_v23 = vadd.s32 %v351_v15, %v347_v7  ;;  %v358_v40 = vadd.s32 %v356_v28, %v350_v22 }
 0x124   : > { %v690_v25 = vpop.f32.mrf.mxu1  ;;  %v325_v58 = vshrl.u32 %v1787_v51, 16 }
 0x125   : > { %v733_v0 = vadd.f32 %v690_v25, %v644_v53  ;;  %vm359_vm15 = vc.u32 %v357_v23, %v353_v16 }
 0x12a   : > { %v710_v27 = vpop.f32.mrf.mxu2 }
 0x12b   : > { %v1762_v29 = vpop.f32.mrf.mxu3  ;;  %v734_v1 = vadd.f32 %v710_v27, %v645_v59  ;;  %v331_v27 = vsel %vm330_vm13, 1, %v1593_v57 }
 0x12c   : > { %v779_v32 = vpop.f32.mrf.mxu0  ;;  %v735_v26 = vadd.f32 %v1762_v29, %v646_v17  ;;  %v333_v38 = vadd.s32 %v331_v27, %v329_v21 }
 0x12d   : > { %v799_v30 = vpop.f32.mrf.mxu1  ;;  %v822_v9 = vadd.f32 %v779_v32, %v733_v0  ;;  %v294_v32 = vshrl.u32 %v1772_v37, 16  ;;  %v296_v37 = vshrl.u32 %v1784_v46, 16 }
 0x12e   : > { %v823_v18 = vadd.f32 %v799_v30, %v734_v1  ;;  %v334_v59 = vadd.s32 %v333_v38, %v323_v36 }
 0x12f   : > { %v305_v53 = vadd.s32 %v304_v34, %v294_v32 }
 0x131   : > { %v306_v63 = vadd.s32 %v305_v53, %v296_v37 }
 0x132   : > { %v1777_v41 = vpop.f32.mrf.mxu2 }
 0x133   : > { %v307_v51 = vshrl.u32 %v306_v63, 4 }
 0x13a   : > { %v868_v42 = vpop.f32.mrf.mxu3 }
 0x13b   : > { %v1779_v43 = vpop.f32.mrf.mxu1  ;;  %v911_v19 = vadd.f32 %v868_v42, %v822_v9  ;;  %v824_v42 = vadd.f32 %v1777_v41, %v735_v26  ;;  %v352_v41 = vshrl.u32 %v1795_v3, 16 }
 0x13d   : > { %v888_v49 = vpop.f32.mrf.mxu0  ;;  %v913_v29 = vadd.f32 %v1779_v43, %v824_v42  ;;  %v354_v43 = vshrl.u32 %v1801_v8, 16 }
 0x13e   : > { %v912_v24 = vadd.f32 %v888_v49, %v823_v18  ;;  %v360_v49 = vsel %vm359_vm15, 1, %v1593_v57 }
 0x13f   : > { %v362_v60 = vadd.s32 %v360_v49, %v358_v40 }
 0x141   : > { %v363_v5 = vadd.s32 %v362_v60, %v352_v41 }
 0x143   : > { %v957_v4 = vpop.f32.mrf.mxu2  ;;  %v364_v11 = vadd.s32 %v363_v5, %v354_v43 }
 0x144   : > { %v1046_v10 = vpop.f32.mrf.mxu1  ;;  %v977_v12 = vpop.f32.mrf.mxu3  ;;  %v1000_v25 = vadd.f32 %v957_v4, %v911_v19  ;;  %v335_v4 = vadd.s32 %v334_v59, %v325_v58 }
 0x145   : > { %v997_v13 = vpop.f32.mrf.mxu0  ;;  %v1001_v30 = vadd.f32 %v977_v12, %v912_v24  ;;  %v365_v16 = vshrl.u32 %v364_v11, 4 }
 0x146   : > { %v1089_v45 = vadd.f32 %v1046_v10, %v1000_v25  ;;  %v1002_v61 = vadd.f32 %v997_v13, %v913_v29  ;;  %v336_v3 = vshrl.u32 %v335_v4, 4  ;;  %v308_v13 = vmul.u32 18, %v307_v51 }
 0x147   : > { %v366_v22 = vmul.u32 18, %v365_v16 }
 0x148   : > { %v337_v15 = vmul.u32 18, %v336_v3  ;;  %v309_v8 = vsub.s32 %v1764_v31, %v308_v13 }
 0x149   : > { %v367_v27 = vsub.s32 %v1782_v44, %v366_v22 }
 0x14a   : > { %v338_v21 = vsub.s32 %v1767_v33, %v337_v15  ;;  %vm370_vm0 = vcmp.ne.s32.totalorder %v309_v8, 0  ;;  %vm373_vm1 = vcmp.lt.s32.totalorder %v309_v8, 0  ;;  %v379_v24 = vadd.s32 18, %v309_v8 }
 0x14b   : > { %v1066_v35 = vpop.f32.mrf.mxu2  ;;  %vm1826_vm4 = vmand %vm373_vm1, %vm370_vm0  ;;  %vm372_vm6 = vcmp.ne.s32.totalorder %v367_v27, 0  ;;  %vm375_vm7 = vcmp.lt.s32.totalorder %v367_v27, 0  ;;  %v381_v36 = vadd.s32 18, %v367_v27 }
 0x14c   : > { %v1090_v47 = vadd.f32 %v1066_v35, %v1001_v30  ;;  %v1155_v48 = vpop.f32.mrf.mxu1  ;;  %v1086_v56 = vpop.f32.mrf.mxu3  ;;  %vm371_vm2 = vcmp.ne.s32.totalorder %v338_v21, 0  ;;  %vm374_vm3 = vcmp.lt.s32.totalorder %v338_v21, 0  ;;  %v380_v33 = vadd.s32 18, %v338_v21  ;;  %vm1839_vm8 = vmand %vm375_vm7, %vm372_vm6 }
 0x14d   : > { %v1135_v50 = vpop.f32.mrf.mxu0  ;;  %v1091_v0 = vadd.f32 %v1086_v56, %v1002_v61  ;;  %vm1831_vm5 = vmand %vm374_vm3, %vm371_vm2  ;;  %v382_v44 = vsel %vm1826_vm4, %v379_v24, %v309_v8  ;;  %v384_v56 = vsel %vm1839_vm8, %v381_v36, %v367_v27  ;;  %vm1257_vm8 = vcmask 261120  }
 0x14e   : > { %v1178_v54 = vadd.f32 %v1135_v50, %v1089_v45  ;;  %v1179_v55 = vadd.f32 %v1155_v48, %v1090_v47  ;;  %v383_v38 = vsel %vm1831_vm5, %v380_v33, %v338_v21  ;;  %vm1843_vm9 = vcmp.lt.s32.totalorder %v382_v44, 16 }
 0x14f   : > { %vm1847_vm12 = vcmp.lt.s32.totalorder %v383_v38, 16  ;;  %vm1860_vm4 = vcmp.lt.s32.totalorder %v384_v56, 16  ;;  %v1529_v56 = vld [vmem:[%s1932_s6 + $0x8] sm:$0xff] }
 0x150   : > { %v1186_v62 = vmul.f32 %v1184_v52, %v1178_v54  ;;  %v1187_v57 = vmul.f32 %v1184_v52, %v1179_v55 }
 0x152   : > { %v1194_v1 = vadd.f32 %v1192_v39, %v1186_v62  ;;  %v1195_v46 = vadd.f32 %v1192_v39, %v1187_v57 }
 0x153   : > { %v1175_v2 = vpop.f32.mrf.mxu2 }
 0x154   : > { %v1521_v6 = vmul.f32 -1.442695, %v1194_v1  ;;  %v1522_v7 = vmul.f32 -1.442695, %v1195_v46  ;;  %v1180_v9 = vadd.f32 %v1175_v2, %v1091_v0 }
 0x156   : > { %1555 = vpow2.f32 %v1521_v6  ;;  %v1188_v10 = vmul.f32 %v1184_v52, %v1180_v9 }
 0x157   : > { %1557 = vpow2.f32 %v1522_v7 }
 0x158   : > { %v1196_v12 = vadd.f32 %v1192_v39, %v1188_v10 }
 0x15a   : > { %v1523_v14 = vmul.f32 -1.442695, %v1196_v12 }
 0x15c   : > { %v1556_v17 = vpop.eup %1555  ;;  %1559 = vpow2.f32 %v1523_v14 }
 0x15d   : > { %v1558_v18 = vpop.eup %1557  ;;  %v1206_v19 = vadd.f32 1.0, %v1556_v17  ;;  %v1526_v17 = vld [vmem:[%s1930_s4 + $0x10] sm:$0xff] }
 0x15e   : > { %v1207_v20 = vadd.f32 1.0, %v1558_v18  ;;  %v1271_v18 = vld [vmem:[%s1930_s4] sm:$0xff] }
 0x15f   : > { %1561 = vrcp.f32 %v1206_v19  ;;  %v1220_v40 = vand.u32 2147483648, %v1206_v19  ;;  %v1218_v52 = vand.u32 2147483647, %v1206_v19  ;;  %vm1214_vm13 = vweird.f32 %v1206_v19 }
 0x160   : > { %1563 = vrcp.f32 %v1207_v20  ;;  %v1235_v49 = vand.u32 2147483648, %v1207_v20  ;;  %v1233_v53 = vand.u32 2147483647, %v1207_v20  ;;  %vm1229_vm15 = vweird.f32 %v1207_v20 }
 0x161   : > { %v1221_v39 = vor.u32 1.1754944e-38, %v1220_v40  ;;  %vm1219_vm1 = vcmp.eq.f32.partialorder %v1218_v52, 8.507059e+37 }
 0x162   : > { %v1560_v23 = vpop.eup %1559  ;;  %v1236_v41 = vor.u32 1.1754944e-38, %v1235_v49  ;;  %vm1234_vm2 = vcmp.eq.f32.partialorder %v1233_v53, 8.507059e+37  ;;  %v1524_v49 = vld [vmem:[%s1930_s4 + $0x8] sm:$0xff] }
 0x163   : > { %v1823_v25 = vadd.f32 1.0, %v1560_v23 }
 0x165   : > { %v1562_v31 = vpop.eup %1561  ;;  %1565 = vrcp.f32 %v1823_v25  ;;  %v1250_v61 = vand.u32 2147483648, %v1823_v25  ;;  %v1248_v57 = vand.u32 2147483647, %v1823_v25  ;;  %vm1244_vm5 = vweird.f32 %v1823_v25 }
 0x166   : > { %v1564_v32 = vpop.eup %1563  ;;  %v1210_v26 = vmul.f32 %v1562_v31, %v1206_v19  ;;  %vm1215_vm10 = vweird.f32 %v1562_v31 }
 0x167   : > { %v1225_v30 = vmul.f32 %v1564_v32, %v1207_v20  ;;  %vm1230_vm11 = vweird.f32 %v1564_v32  ;;  %vm1216_vm14 = vmor %vm1214_vm13, %vm1215_vm10  ;;  %v1251_v4 = vor.u32 1.1754944e-38, %v1250_v61  ;;  %vm1249_vm7 = vcmp.eq.f32.partialorder %v1248_v57, 8.507059e+37 }
 0x168   : > { %v1211_v35 = vsub.f32 1.0, %v1210_v26  ;;  %vm1231_vm0 = vmor %vm1229_vm15, %vm1230_vm11 }
 0x169   : > { %v1226_v42 = vsub.f32 1.0, %v1225_v30  ;;  %v1527_v30 = vld [vmem:[%s1931_s5 + $0x1] sm:$0x1] }
 0x16a   : > { %v1212_v48 = vmul.f32 %v1562_v31, %v1211_v35  ;;  %v1272_v35 = vld [vmem:[%s1931_s5] sm:$0x1] }
 0x16b   : > { %v1566_v50 = vpop.eup %1565  ;;  %v1227_v37 = vmul.f32 %v1564_v32, %v1226_v42 }
 0x16c   : > { %v1213_v54 = vadd.f32 %v1562_v31, %v1212_v48  ;;  %v1240_v55 = vmul.f32 %v1566_v50, %v1823_v25  ;;  %vm1245_vm3 = vweird.f32 %v1566_v50  ;;  %v1528_v48 = vld [vmem:[%s1930_s4 + $0x18] sm:$0xff] }
 0x16d   : > { %v1228_v58 = vadd.f32 %v1564_v32, %v1227_v37  ;;  %vm1246_vm6 = vmor %vm1244_vm5, %vm1245_vm3 }
 0x16e   : > { %v1217_v59 = vsel %vm1216_vm14, %v1562_v31, %v1213_v54  ;;  %v1241_v60 = vsub.f32 1.0, %v1240_v55  ;;  %v1275_v55 = vld [vmem:[%s1932_s6] sm:$0xff] }
 0x16f   : > { %v1232_v62 = vsel %vm1231_vm0, %v1564_v32, %v1228_v58  ;;  %v1856_v63 = vsel %vm1219_vm1, %v1221_v39, %v1217_v59 }
 0x170   : > { %v1858_v0 = vsel %vm1234_vm2, %v1236_v41, %v1232_v62  ;;  %v1242_v1 = vmul.f32 %v1566_v50, %v1241_v60  ;;  %v1263_v43 = vsel %vm1843_vm9, %v1856_v63, 2.0  ;;  %v1254_v6 = vsel %vm1843_vm9, %v1856_v63, -1.0 }
 0x171   : > { %v1264_v5 = vsel %vm1847_vm12, %v1858_v0, 2.0  ;;  %v1255_v7 = vsel %vm1847_vm12, %v1858_v0, -1.0  ;;  %vm1277_vm9 = vcmask 64512  }
 0x172   : > { %v1243_v2 = vadd.f32 %v1566_v50, %v1242_v1  ;;  %v1267_v3 = vmin.f32 %v1263_v43, %v1264_v5  ;;  %v1259_v12 = vmax.f32 %v1254_v6, %v1255_v7 }
 0x174   : > { %v1247_v9 = vsel %vm1246_vm6, %v1566_v50, %v1243_v2 }
 0x175   : > { %v1877_v51 = vsel %vm1249_vm7, %v1251_v4, %v1247_v9 }
 0x176   : > { %v1265_v10 = vsel %vm1860_vm4, %v1877_v51, 2.0  ;;  %v1256_v11 = vsel %vm1860_vm4, %v1877_v51, -1.0 }
 0x177   : > { %v1266_v13 = vsel %vm1257_vm8, %v1265_v10, inf  ;;  %v1258_v14 = vsel %vm1257_vm8, %v1256_v11, -inf }
 0x178   : > { %v1268_v15 = vmin.f32 %v1267_v3, %v1266_v13  ;;  %v1260_v16 = vmax.f32 %v1259_v12, %v1258_v14 }
 0x17a   : > { %1269 = vmin.xlane.f32.xlu1 %v1268_v15  ;;  %1261 = vmax.xlane.f32.xlu2 %v1260_v16 }
 0x1ed   : > { %v1270_v19 = vpop.xlane.xlu1 %1269  ;;  %v1262_v8 = vpop.xlane.xlu2 %1261 }
 0x1ee   : > { %v1320_v20 = vmul.f32 %v1526_v17, %v1270_v19  ;;  %v1276_v21 = vmul.f32 %v1271_v18, %v1262_v8 }
 0x1f0   : > { %v1321_v22 = vsel %vm1277_vm9, %v1320_v20, 0.0  ;;  %v1278_v23 = vsel %vm1277_vm9, %v1276_v21, 0.0 }
 0x1f1   : > { %v1322_v24 = vrot.slane %v1321_v22, 4  ;;  %v1279_v25 = vrot.slane %v1278_v23, 4 }
 0x1f3   : > { %v1323_v27 = vadd.f32 %v1322_v24, %v1321_v22  ;;  %v1280_v28 = vadd.f32 %v1279_v25, %v1278_v23 }
 0x1f5   : > { %v1324_v31 = vrot.slane %v1323_v27, 2  ;;  %v1281_v33 = vrot.slane %v1280_v28, 2 }
 0x1f7   : > { %v1325_v32 = vadd.f32 %v1324_v31, %v1323_v27  ;;  %v1282_v34 = vadd.f32 %v1281_v33, %v1280_v28 }
 0x1f9   : > { %v1326_v26 = vrot.slane %v1325_v32, 1  ;;  %v1283_v44 = vrot.slane %v1282_v34, 1 }
 0x1fb   : > { %v1327_v36 = vadd.f32 %v1326_v26, %v1325_v32  ;;  %v1284_v38 = vadd.f32 %v1283_v44, %v1282_v34 }
 0x1fd   : > { %v1328_v40 = vadd.f32 %v1527_v30, %v1327_v36  ;;  %v1285_v42 = vadd.f32 %v1284_v38, %v1272_v35 }
 0x1ff   : > { %v1329_v45 = vmax.f32 %v1328_v40, 0.0  ;;  %v1286_v47 = vmax.f32 %v1285_v42, 0.0 }
 0x201   : > { %v1330_v50 = vperm.slane %v1329_v45, 0  ;;  %v1287_v52 = vperm.slane %v1286_v47, 0 }
 0x203   : > { %v1331_v37 = vmul.f32 %v1528_v48, %v1330_v50  ;;  %v1288_v53 = vmul.f32 %v1524_v49, %v1287_v52 }
 0x205   : > { %v1332_v29 = vsel %vm1277_vm9, %v1331_v37, 0.0  ;;  %v1289_v54 = vsel %vm1277_vm9, %v1288_v53, 0.0 }
 0x206   : > { %1333 = vadd.xlane.f32.xlu2 %v1332_v29  ;;  %1290 = vadd.xlane.f32.xlu0 %v1289_v54 }
 0x279   : > { %v1291_v39 = vpop.xlane.xlu0 %1290  ;;  %v1334_v58 = vpop.xlane.xlu2 %1333 }
 0x27a   : > { %v1292_v59 = vadd.f32 %v1291_v39, %v1275_v55  ;;  %v1335_v41 = vadd.f32 %v1529_v56, %v1334_v58 }
 0x27c   : > { %v1525_v60 = vmul.f32 -1.442695, %v1292_v59  ;;  %v1530_v61 = vmul.f32 -1.442695, %v1335_v41 }
 0x27e   : > { %1567 = vpow2.f32 %v1525_v60 }
 0x27f   : > { %1569 = vpow2.f32 %v1530_v61 }
 0x284   : > { %v1568_v62 = vpop.eup %1567 }
 0x285   : > { %v1570_v57 = vpop.eup %1569  ;;  %v1296_v1 = vadd.f32 1.0, %v1568_v62 }
 0x286   : > { %v1339_v46 = vadd.f32 1.0, %v1570_v57 }
 0x287   : > { %1571 = vrcp.f32 %v1296_v1  ;;  %v1308_v7 = vand.u32 2147483648, %v1296_v1  ;;  %v1306_v3 = vand.u32 2147483647, %v1296_v1  ;;  %vm1302_vm12 = vweird.f32 %v1296_v1 }
 0x288   : > { %1573 = vrcp.f32 %v1339_v46  ;;  %v1351_v11 = vand.u32 2147483648, %v1339_v46  ;;  %v1349_v13 = vand.u32 2147483647, %v1339_v46  ;;  %vm1345_vm14 = vweird.f32 %v1339_v46 }
 0x289   : > { %v1309_v15 = vor.u32 1.1754944e-38, %v1308_v7  ;;  %vm1307_vm15 = vcmp.eq.f32.partialorder %v1306_v3, 8.507059e+37 }
 0x28a   : > { %v1352_v18 = vor.u32 1.1754944e-38, %v1351_v11  ;;  %vm1350_vm1 = vcmp.eq.f32.partialorder %v1349_v13, 8.507059e+37 }
 0x28d   : > { %v1572_v2 = vpop.eup %1571 }
 0x28e   : > { %v1574_v4 = vpop.eup %1573  ;;  %v1298_v43 = vmul.f32 %v1572_v2, %v1296_v1  ;;  %vm1303_vm10 = vweird.f32 %v1572_v2 }
 0x28f   : > { %v1341_v5 = vmul.f32 %v1574_v4, %v1339_v46  ;;  %vm1346_vm11 = vweird.f32 %v1574_v4  ;;  %vm1304_vm13 = vmor %vm1302_vm12, %vm1303_vm10 }
 0x290   : > { %v1299_v6 = vsub.f32 1.0, %v1298_v43  ;;  %vm1347_vm0 = vmor %vm1345_vm14, %vm1346_vm11 }
 0x291   : > { %v1342_v9 = vsub.f32 1.0, %v1341_v5 }
 0x292   : > { %v1300_v10 = vmul.f32 %v1572_v2, %v1299_v6 }
 0x293   : > { %v1343_v12 = vmul.f32 %v1574_v4, %v1342_v9 }
 0x294   : > { %v1301_v14 = vadd.f32 %v1572_v2, %v1300_v10 }
 0x295   : > { %v1344_v16 = vadd.f32 %v1574_v4, %v1343_v12 }
 0x296   : > { %v1305_v17 = vsel %vm1304_vm13, %v1572_v2, %v1301_v14 }
 0x297   : > { %v1310_v19 = vsel %vm1307_vm15, %v1309_v15, %v1305_v17  ;;  %v1348_v8 = vsel %vm1347_vm0, %v1574_v4, %v1344_v16 }
 0x298   : > { %v1353_v20 = vsel %vm1350_vm1, %v1352_v18, %v1348_v8 }
 0x299   : > { %1374 = vperm.xlu2 %1554, %v1353_v20   ;;  %v1355_v21 = vsub.f32 %v1310_v19, %v1353_v20 }
 0x29b   : > { %v1356_v22 = vmax.f32 %v1355_v21, 1e-05 }
 0x29d   : > { %1575 = vrcp.f32 %v1356_v22  ;;  %v1368_v27 = vand.u32 2147483648, %v1356_v22  ;;  %v1366_v31 = vand.u32 2147483647, %v1356_v22  ;;  %vm1362_vm3 = vweird.f32 %v1356_v22 }
 0x29f   : > { %v1369_v32 = vor.u32 1.1754944e-38, %v1368_v27  ;;  %vm1367_vm5 = vcmp.eq.f32.partialorder %v1366_v31, 8.507059e+37 }
 0x2a3   : > { %v1576_v23 = vpop.eup %1575 }
 0x2a4   : > { %v1358_v24 = vmul.f32 %v1576_v23, %v1356_v22  ;;  %vm1363_vm2 = vweird.f32 %v1576_v23 }
 0x2a5   : > { %vm1364_vm4 = vmor %vm1362_vm3, %vm1363_vm2 }
 0x2a6   : > { %v1359_v25 = vsub.f32 1.0, %v1358_v24 }
 0x2a8   : > { %v1360_v28 = vmul.f32 %v1576_v23, %v1359_v25 }
 0x2aa   : > { %v1361_v33 = vadd.f32 %v1576_v23, %v1360_v28 }
 0x2ac   : > { %v1365_v34 = vsel %vm1364_vm4, %v1576_v23, %v1361_v33 }
 0x2ad   : > { %v1370_v26 = vsel %vm1367_vm5, %v1369_v32, %v1365_v34 }
 0x2ae   : > { %1382 = vperm.xlu1 %1553, %v1370_v26  }
 0x2f3   : > { %v1375_v44 = vpop.permute.xlu2 %1374 }
 0x2f4   : > { %v1377_v30 = vsub.f32 %v1856_v63, %v1375_v44  ;;  %v1378_v35 = vsub.f32 %v1858_v0, %v1375_v44  ;;  %v1379_v36 = vsub.f32 %v1877_v51, %v1375_v44 }
 0x320   : > { %v1383_v38 = vpop.permute.xlu1 %1382 }
 0x321   : > { %v1385_v40 = vmul.f32 %v1383_v38, %v1377_v30  ;;  %v1386_v42 = vmul.f32 %v1383_v38, %v1378_v35  ;;  %v1387_v45 = vmul.f32 %v1383_v38, %v1379_v36 }
 0x323   : > { %v1388_v47 = vmax.f32 %v1385_v40, 0.0  ;;  %v1389_v48 = vmax.f32 %v1386_v42, 0.0  ;;  %v1390_v49 = vmax.f32 %v1387_v45, 0.0 }
 0x325   : > { %v1391_v50 = vmin.f32 %v1388_v47, 1.0  ;;  %v1392_v52 = vmin.f32 %v1389_v48, 1.0  ;;  %v1393_v37 = vmin.f32 %v1390_v49, 1.0 }
 0x327   : > { %1394 = vst [vmem:[%s278_s14] sm:$0xff] %v1391_v50 }
 0x328   : > { %1395 = vst [vmem:[%s278_s14 + $0x8] sm:$0xff] %v1392_v52 }
 0x329   : > { %1396 = vst.msk [vmem:[%s278_s14 + $0x10] sm:$0xff] %vm1257_vm8, %v1393_v37 }
 0x32a PF: > { %s17_s24 = sadd.s32 1, %s1583_s24  }
 0x32b   : > { %p14_p4 = scmp.ge.s32.totalorder %s17_s24, 4  }
 0x32d   :  { %16 = sbr.rel (!%p14_p4) target bundleno = 1 (0x1), region = 100 }

</bundles_post_ra>
